<compile_context>
chip_gen: v7x
topology: tpu7x:2x2x1
jax: 0.10.0
libtpu: 0.0.40
codegen_flags: <defaults>
</compile_context>

<pallas_src>
import functools
import math

import jax
import jax.numpy as jnp
import numpy as np
from jax.experimental import pallas as pl
from jax.experimental.pallas import tpu as pltpu

FUNC_COUNT = 8           # renderer.func_count
H = W = 32               # rendered image resolution (small synthetic size)
BATCH = 2                # >= 2 so v7x's two TensorCores both get a program
BASELINE_EXPOSURE = 1.0  # renderer.baseline_exposure (renderer not provided)


# ----------------------------- plain-JAX glue (parameter setup) ---------------
def make_rotation(theta):
    c, s = jnp.cos(theta), jnp.sin(theta)
    return jnp.stack(
        [jnp.stack([c, -s], axis=-1), jnp.stack([s, c], axis=-1)], axis=-2
    )


def convert_affine(inp):
    # Mirrors the PyTorch convert_affine() used to initialize affine_params.
    assert inp.shape[-1] == 6
    sig = jax.nn.sigmoid(inp[..., :4])
    t = jnp.zeros((*inp.shape[:-1], 2, 2), dtype=inp.dtype)
    t = t.at[..., 0, 0].set(sig[..., 0] * 0.8 + 0.05)
    t = make_rotation(sig[..., 1] * (math.pi * 0.4)) @ t
    t = t.at[..., 1, 1].set(sig[..., 2] * 0.8 + 0.05)
    t = make_rotation(sig[..., 3] * (math.pi * 2.0)) @ t
    trans = (jax.nn.sigmoid(inp[..., 4:]) - 0.5) * 2.0
    return jnp.concatenate([t, trans[..., None]], axis=-1)  # (..., 2, 3)


def convert_parameters(prob_norm, colour_transform_raw, background_colour_raw):
    # Mirrors Network.convert_parameters().
    p = jax.nn.sigmoid(prob_norm) + 0.001
    p = p.reshape(-1, FUNC_COUNT, FUNC_COUNT)
    p = p / jnp.sum(p, axis=-2, keepdims=True)
    ct = jax.nn.sigmoid(colour_transform_raw)
    bg = jax.nn.sigmoid(background_colour_raw)
    return p, ct, bg


# ----------------------------- Pallas kernel (hot path) -----------------------
def _postprocess_kernel(scal_ref, ct_ref, bg_ref, colour_ref, out_ref,
                        *, use_sqrt):
    # scal_ref: SMEM (2,)  = [norm_exposure, 1/gamma]
    # ct_ref:   VMEM (3, F) sigmoided colour transform (grid-invariant)
    # bg_ref:   VMEM (3, 1) sigmoided background colour (grid-invariant)
    # colour_ref: VMEM (1, F, tile) raw per-function densities
    # out_ref:  VMEM (1, 3, tile) RGB image tile
    c = colour_ref[0]                                    # (F, tile) raw density
    hist = jnp.sum(c, axis=0, keepdims=True)             # (1, tile)   (XLU)

    norm_exposure = scal_ref[0]
    alpha = 1.0 - jnp.exp(-hist * norm_exposure)         # (1, tile)   (EUP)

    # 1/(hist+eps): EUP approximate reciprocal + one Newton step for full f32
    # accuracy (keeps the reference tolerance while staying off the VALU).
    x = hist + 1e-5
    r = pl.reciprocal(x, approx=True)
    r = r * (2.0 - x * r)
    scale = alpha * r                                    # (1, tile)

    # Fused normalisation: (ct @ c) * 1/hist == ct @ (c / hist).
    # N = tile (>= 512 lanes) so the small-M/K MXU push is fully amortised.
    rgb = jnp.dot(ct_ref[...], c, preferred_element_type=jnp.float32)  # (3,tile)

    blended = rgb * scale + bg_ref[...] * (1.0 - alpha)  # (3, tile)
    blended = jnp.clip(blended, 0.0, 1.0)
    if use_sqrt:                                         # gamma == 2 fast path
        out = jnp.sqrt(blended)
    else:
        out = jnp.power(blended, scal_ref[1])
    # Output uses 3 of 8 sublanes -> masked stores; accepted (minor cost).
    out_ref[0] = out.astype(out_ref.dtype)


def postprocess_fractal_pallas(colour, colour_transform, background_colour,
                               norm_exposure, gamma, *, lane_tile=None,
                               out_dtype=jnp.float32):
    """colour: (B, F, H, W) per-function density accumulation.
    colour_transform: (3, F) sigmoided colour map.
    background_colour: (1, 3) sigmoided background.
    Returns (B, 3, H, W) postprocessed RGB image (out_dtype, default f32;
    bf16 halves HBM writeback if the consumer tolerates it).
    """
    B, F, Hh, Ww = colour.shape
    HW = Hh * Ww
    if lane_tile is None:
        lane_tile = HW                        # whole image per block
    assert HW % lane_tile == 0 and lane_tile % 128 == 0

    colour2 = colour.reshape(B, F, HW).astype(jnp.float32)
    ct = colour_transform.astype(jnp.float32)                     # (3, F)
    bg = background_colour.reshape(3, 1).astype(jnp.float32)      # (3, 1)
    # Runtime scalars live in SMEM -> no recompile when exposure/gamma change.
    scalars = jnp.array([norm_exposure, 1.0 / float(gamma)], dtype=jnp.float32)
    use_sqrt = float(gamma) == 2.0            # structural fast path

    kernel = functools.partial(_postprocess_kernel, use_sqrt=use_sqrt)

    out = pl.pallas_call(
        kernel,
        out_shape=jax.ShapeDtypeStruct((B, 3, HW), out_dtype),
        grid_spec=pltpu.PrefetchScalarGridSpec(
            num_scalar_prefetch=1,            # scalars -> SMEM
            grid=(B, HW // lane_tile),
            in_specs=[
                pl.BlockSpec((3, F), lambda b, t, s: (0, 0)),
                pl.BlockSpec((3, 1), lambda b, t, s: (0, 0)),
                pl.BlockSpec((1, F, lane_tile), lambda b, t, s: (b, 0, t)),
            ],
            out_specs=pl.BlockSpec((1, 3, lane_tile), lambda b, t, s: (b, 0, t)),
        ),
        compiler_params=pltpu.CompilerParams(
            dimension_semantics=("parallel", "parallel")),
    )(scalars, ct, bg, colour2)
    return out.reshape(B, 3, Hh, Ww)


def postprocess_reference(colour, colour_transform, background_colour,
                          norm_exposure, gamma):
    hist = colour.sum(axis=-3)                              # (B, H, W)
    c_norm = colour / (hist[:, None, ...] + 1e-05)          # (B, F, H, W)
    rgb = jnp.einsum("cf,bfhw->bchw", colour_transform, c_norm)
    alpha = 1.0 - jnp.exp(-hist * norm_exposure)            # (B, H, W)
    bg = background_colour[0][None, :, None, None]
    blended = rgb * alpha[:, None] + bg * (1.0 - alpha[:, None])
    return jnp.power(jnp.clip(blended, 0.0, 1.0), 1.0 / gamma)


# ----------------------------------- main --------------------------------------
if __name__ == "__main__":
    key = jax.random.PRNGKey(0)
    k1, k2, k3, k4, k5 = jax.random.split(key, 5)

    # Deterministic parameter init mirroring Network.__init__ (use_alpha=False).
    prob_norm = jax.random.normal(k1, (1, FUNC_COUNT, FUNC_COUNT), jnp.float32)
    affine_params = convert_affine(
        jax.random.normal(k2, (1, FUNC_COUNT, 6), jnp.float32))
    colour_transform_raw = jax.random.normal(k3, (1, 3, FUNC_COUNT), jnp.float32)
    background_colour_raw = jax.random.normal(k4, (1, 3), jnp.float32)

    prob_params, colour_transform, background_colour = convert_parameters(
        prob_norm, colour_transform_raw, background_colour_raw)

    # TODO(synk): FractalRenderer.apply (stochastic chaos-game splatting using
    # affine_params / prob_params) has no provided reference implementation;
    # substitute a deterministic non-negative per-function density field.
    colour = jax.nn.softplus(
        jax.random.normal(k5, (BATCH, FUNC_COUNT, H, W), jnp.float32))

    exposure = 1.5
    kernel_radius = 2.0
    gamma = 2.0
    norm_exposure = exposure * BASELINE_EXPOSURE / (kernel_radius ** 2)

    img = postprocess_fractal_pallas(
        colour, colour_transform[0], background_colour, norm_exposure, gamma)
    jax.block_until_ready(img)

    ref = postprocess_reference(
        colour, colour_transform[0], background_colour, norm_exposure, gamma)
    # Newton-refined approx reciprocal + sqrt fast path keep the kernel within
    # a few ulps of the exact-divide / pow reference.
    np.testing.assert_allclose(np.asarray(img), np.asarray(ref),
                               rtol=2e-4, atol=2e-5)

    print("KERNEL_OK")
</pallas_src>

<mosaic_0001>
module attributes {stable_mosaic.version = 11 : i64} {
  func.func @_postprocess_kernel(%arg0: i32, %arg1: i32, %arg2: memref<2xf32, #tpu.memory_space<smem>>, %arg3: memref<3x8xf32, #tpu.memory_space<vmem>>, %arg4: memref<3x1xf32, #tpu.memory_space<vmem>>, %arg5: memref<1x8x1024xf32, #tpu.memory_space<vmem>>, %arg6: memref<1x3x1024xf32, #tpu.memory_space<vmem>>) attributes {dimension_semantics = [#tpu.dimension_semantics<parallel>, #tpu.dimension_semantics<parallel>], iteration_bounds = array<i64: 2, 1>, scalar_prefetch = 1 : i64, scratch_operands = 0 : i64, tpu.core_type = #tpu.core_type<tc>, window_params = [{pipeline_mode = #tpu.pipeline_mode<synchronous>, transform_indices = @transform_0, window_bounds = array<i64: 3, 8>}, {pipeline_mode = #tpu.pipeline_mode<synchronous>, transform_indices = @transform_1, window_bounds = array<i64: 3, 1>}, {transform_indices = @transform_2, window_bounds = array<i64: 1, 8, 1024>}, {transform_indices = @transform_3, window_bounds = array<i64: 1, 3, 1024>}]} {
    %c0 = arith.constant 0 : index
    %c0_0 = arith.constant 0 : index
    %c0_1 = arith.constant 0 : index
    %0 = vector.load %arg5[%c0, %c0_0, %c0_1] : memref<1x8x1024xf32, #tpu.memory_space<vmem>>, vector<1x8x1024xf32>
    %1 = vector.shape_cast %0 : vector<1x8x1024xf32> to vector<8x1024xf32>
    %cst = arith.constant dense<0.000000e+00> : vector<1024xf32>
    %2 = vector.multi_reduction <add>, %1, %cst [0] : vector<8x1024xf32> to vector<1024xf32>
    %3 = vector.shape_cast %2 : vector<1024xf32> to vector<1x1024xf32>
    %c0_2 = arith.constant 0 : index
    %4 = memref.load %arg2[%c0_2] : memref<2xf32, #tpu.memory_space<smem>>
    %cst_3 = arith.constant 0.000000e+00 : f32
    %5 = vector.broadcast %cst_3 : f32 to vector<1x1024xf32>
    %6 = arith.subf %5, %3 : vector<1x1024xf32>
    %7 = vector.broadcast %4 : f32 to vector<1x1024xf32>
    %8 = arith.mulf %6, %7 : vector<1x1024xf32>
    %9 = math.exp %8 : vector<1x1024xf32>
    %cst_4 = arith.constant 1.000000e+00 : f32
    %10 = vector.broadcast %cst_4 : f32 to vector<1x1024xf32>
    %11 = arith.subf %10, %9 : vector<1x1024xf32>
    %cst_5 = arith.constant 9.99999974E-6 : f32
    %12 = vector.broadcast %cst_5 : f32 to vector<1x1024xf32>
    %13 = arith.addf %3, %12 : vector<1x1024xf32>
    %14 = tpu.reciprocal %13 {approx = true} : vector<1x1024xf32> -> vector<1x1024xf32>
    %15 = arith.mulf %13, %14 : vector<1x1024xf32>
    %cst_6 = arith.constant 2.000000e+00 : f32
    %16 = vector.broadcast %cst_6 : f32 to vector<1x1024xf32>
    %17 = arith.subf %16, %15 : vector<1x1024xf32>
    %18 = arith.mulf %14, %17 : vector<1x1024xf32>
    %19 = arith.mulf %11, %18 : vector<1x1024xf32>
    %c0_7 = arith.constant 0 : index
    %c0_8 = arith.constant 0 : index
    %20 = vector.load %arg3[%c0_7, %c0_8] : memref<3x8xf32, #tpu.memory_space<vmem>>, vector<3x8xf32>
    %cst_9 = arith.constant dense<0.000000e+00> : vector<3x1024xf32>
    %21 = tpu.matmul %20, %1, %cst_9 {dimension_numbers = #tpu.dot_dimension_numbers<[1], [0], [0], [1], [0, 0, 1, 1], [], []>} : vector<3x8xf32>, vector<8x1024xf32>, vector<3x1024xf32> -> vector<3x1024xf32>
    %22 = vector.broadcast %19 : vector<1x1024xf32> to vector<3x1024xf32>
    %23 = arith.mulf %21, %22 : vector<3x1024xf32>
    %c0_10 = arith.constant 0 : index
    %c0_11 = arith.constant 0 : index
    %24 = vector.load %arg4[%c0_10, %c0_11] : memref<3x1xf32, #tpu.memory_space<vmem>>, vector<3x1xf32>
    %cst_12 = arith.constant 1.000000e+00 : f32
    %25 = vector.broadcast %cst_12 : f32 to vector<1x1024xf32>
    %26 = arith.subf %25, %11 : vector<1x1024xf32>
    %27 = vector.broadcast %24 : vector<3x1xf32> to vector<3x1024xf32>
    %28 = vector.broadcast %26 : vector<1x1024xf32> to vector<3x1024xf32>
    %29 = arith.mulf %27, %28 : vector<3x1024xf32>
    %30 = arith.addf %23, %29 : vector<3x1024xf32>
    %cst_13 = arith.constant 0.000000e+00 : f32
    %cst_14 = arith.constant 1.000000e+00 : f32
    %31 = vector.broadcast %cst_13 : f32 to vector<3x1024xf32>
    %32 = arith.maximumf %31, %30 : vector<3x1024xf32>
    %33 = vector.broadcast %cst_14 : f32 to vector<3x1024xf32>
    %34 = arith.minimumf %33, %32 : vector<3x1024xf32>
    %35 = math.sqrt %34 : vector<3x1024xf32>
    %c0_15 = arith.constant 0 : index
    %c0_16 = arith.constant 0 : index
    %c0_17 = arith.constant 0 : index
    %36 = vector.load %arg6[%c0_15, %c0_16, %c0_17] : memref<1x3x1024xf32, #tpu.memory_space<vmem>>, vector<1x3x1024xf32>
    %37 = vector.shape_cast %36 : vector<1x3x1024xf32> to vector<3x1024xf32>
    %38 = vector.shape_cast %35 : vector<3x1024xf32> to vector<1x3x1024xf32>
    tpu.vector_store %arg6[%c0_15, %c0_16, %c0_17], %38 {strides = array<i32>} : memref<1x3x1024xf32, #tpu.memory_space<vmem>>, vector<1x3x1024xf32>,
    return
  }
  func.func @transform_0(%arg0: i32, %arg1: i32, %arg2: memref<2xf32, #tpu.memory_space<smem>>) -> (i32, i32) {
    %c0_i32 = arith.constant 0 : i32
    %c0_i32_0 = arith.constant 0 : i32
    %c0_i32_1 = arith.constant 0 : i32
    return %c0_i32, %c0_i32_0 : i32, i32
  }
  func.func @transform_1(%arg0: i32, %arg1: i32, %arg2: memref<2xf32, #tpu.memory_space<smem>>) -> (i32, i32) {
    %c0_i32 = arith.constant 0 : i32
    %c0_i32_0 = arith.constant 0 : i32
    %c0_i32_1 = arith.constant 0 : i32
    return %c0_i32, %c0_i32_0 : i32, i32
  }
  func.func @transform_2(%arg0: i32, %arg1: i32, %arg2: memref<2xf32, #tpu.memory_space<smem>>) -> (i32, i32, i32) {
    %c0_i32 = arith.constant 0 : i32
    %c0_i32_0 = arith.constant 0 : i32
    return %arg0, %c0_i32, %arg1 : i32, i32, i32
  }
  func.func @transform_3(%arg0: i32, %arg1: i32, %arg2: memref<2xf32, #tpu.memory_space<smem>>) -> (i32, i32, i32) {
    %c0_i32 = arith.constant 0 : i32
    %c0_i32_0 = arith.constant 0 : i32
    return %arg0, %c0_i32, %arg1 : i32, i32, i32
  }
}

</mosaic_0001>

<bundles_post_ra>
// kernel: tpu_custom_call.1
= control target key start
LH: loop header
LB: loop body
LE: loop exit
PB: predicated region body
PF: predicated region fallthrough
CT: control target
= control target key end

     0   :  { %s1306_s0 = inlined_call_operand.vmem [shape: f32[2], index: 0, kind: input, shape index: {}]   ;;  %s1307_s1 = inlined_call_operand.vmem [shape: f32[3,8], index: 1, kind: input, shape index: {}]   ;;  %s1308_s2 = inlined_call_operand.vmem [shape: f32[3,1], index: 2, kind: input, shape index: {}]   ;;  %s1309_s3 = inlined_call_operand.hbm [shape: f32[2,8,1024], index: 3, kind: input, shape index: {}]   ;;  %s1310_s4 = inlined_call_operand.vmem [shape: f32[2,3,1024], index: 4, kind: output, shape index: {}]  }
   0x1   :  { %s9_s17 = sshll.u32 %s1306_s0, 4  ;;  %s10_s17 = int_to_ptr.vmem [resolvable:$true] %s9_s17 }
   0x2   :  { %s1010_s18 = scalar_lea.vmem %s10_s17, 16  ;;  %p1015_p1 = scmp.lt.s32.totalorder %s10_s17, %s10_s17 }
   0x3   :  { %p1011_p0 = scmp.ne.s32.totalorder %s10_s17, %s1010_s18  ;;  %p1016_p2 = scmp.lt.s32.totalorder %s1010_s18, %s1010_s18 }
   0x5   :  { %p1017_p3 = por %p1016_p2, %p1015_p1 }
   0x7   :  { %p1018_p4 = pnand %p1017_p3, %p1011_p0 }
   0x9   :  { %1021 = shalt.err (!%p1018_p4)  }
   0xa   :  { %s1106_s19 = smov [#allocation3]  }
   0xb   :  { %12 = dma.vmem_to_smem %s10_s17, 16, %s1106_s19, [#allocation2] }
   0xc   :  { %1076 = dma.done.wait [#allocation2], 16 }
   0xd   :  { %1077 = vsyncadd [#allocation2], 4294967280 }
   0xe   :  { %14 = sfence }
   0xf   :  { %15 = vsyncpa [#allocation5], 0 }
  0x10   :  { %17 = vsyncpa [#allocation5 + $0x1], 0  ;;  %s1138_s20 = smov 0   ;;  %s1140_s21 = smov 0  }
  0x11   :  { %s1142_s0 = smov 0   ;;  %s1144_s22 = smov 0  }
  0x12   :  { %s1146_s23 = smov 0   ;;  %s1148_s24 = smov 0  }
  0x13 LB: > { %s884_s25 = sadd.s32 4294967295, %s1104_s24   ;;  %s35_s26 = sadd.s32 1, %s1100_s23  ;;  %s1104_s24 = sphi %s1148_s24, %s23_s24   ;;  %s1100_s23 = sphi %s1146_s23, %s1320_s23   ;;  %s1096_s22 = sphi %s1144_s22, %s1319_s22   ;;  %s1092_s0 = sphi %s1142_s0, %s1318_s0   ;;  %s1088_s21 = sphi %s1140_s21, %s1317_s21   ;;  %s1084_s20 = sphi %s1138_s20, %s1316_s20  }
  0x14   : > { %p37_p5 = scmp.ge.s32.totalorder %s35_s26, 2  ;;  %s86_s27 = sadd.s32 1, %s1092_s0 }
  0x15   : > { %p93_p6 = scmp.ne.s32.totalorder %s1092_s0, %s1088_s21  ;;  %p94_p7 = scmp.eq.s32.totalorder %s1104_s24, 0 }
  0x16   : > { %s1322_s26 = smov (%p37_p5, %s35_s26), 0  ;;  %p99_p9 = scmp.ne.s32.totalorder %s1088_s21, %s1084_s20 }
  0x17   : > { %p1174_p8 = por %p94_p7, %p93_p6  ;;  %s81_s29 = ssub.s32 %s1100_s23, %s1322_s26 }
  0x18   : > { %p100_p10 = scmp.eq.s32.totalorder %s884_s25, 0  ;;  %p84_p11 = scmp.eq.s32.totalorder %s81_s29, 0 }
  0x19   : > { %p909_p13 = scmp.lt.s32.totalorder %s1104_s24, 2  ;;  %s157_s6 = sand.u32 1, %s1092_s0  }
  0x1a   : > { %p1181_p12 = por %p100_p10, %p99_p9  ;;  %s901_s7 = sshll.u32 %s1100_s23, 10 }
  0x1b   : > { %s1187_s5 = scalar_select %p84_p11, %s1092_s0, %s86_s27  }
  0x1c   : > { %s888_s8 = sshll.u32 %s157_s6, 6  ;;  %s1194_s11 = scalar_lea.hbm %s1309_s3, %s901_s7 }
  0x1d   : > { %s161_s12 = scalar_lea.vmem [#allocation4], %s888_s8  ;;  %p1198_p0 = pnand %p909_p13, %p1174_p8 }
  0x1e   : > { %s171_s13 = sshll.u32 %s161_s12, 4  ;;  %s158_s15 = scalar_lea.sflag [#allocation5], %s157_s6  ;;  %s1202_s13 = int_to_ptr.vmem [resolvable:$true] %s171_s13 }
  0x1f   : > { %s1022_s16 = scalar_lea.hbm %s1194_s11, 1024  ;;  %p1024_p4 = pneg %p1198_p0 }
  0x20   : > { %p1023_p3 = scmp.ne.s32.totalorder %s1194_s11, %s1022_s16  ;;  %s1027_s19 = scalar_lea.hbm %s1309_s3, 2048 }
  0x21   : > { %p1028_p7 = scmp.lt.u32.totalorder %s1194_s11, %s1309_s3  ;;  %p1029_p8 = scmp.lt.u32.totalorder %s1027_s19, %s1022_s16 }
  0x22   : > { %p1025_p5 = pnand %p1024_p4, %p1023_p3  ;;  %p1031_p10 = scmp.lt.u32.totalorder %s1022_s16, %s1194_s11 }
  0x23   : > { %p1030_p9 = por %p1029_p8, %p1028_p7 }
  0x24   : > { %p1026_p6 = pneg %p1025_p5 }
  0x25   : > { %p1032_p11 = por %p1031_p10, %p1030_p9 }
  0x27   : > { %p1033_p13 = pnand %p1032_p11, %p1026_p6 }
  0x29   : > { %1036 = shalt.err (!%p1033_p13)
}
  0x2a   : > { %s1037_s27 = scalar_lea.vmem %s1202_s13, 1024  ;;  %s1107_s28 = smov [#allocation4]  }
  0x2b   : > { %p1038_p3 = scmp.ne.s32.totalorder %s1202_s13, %s1037_s27  ;;  %s1042_s29 = sshll.u32 %s1107_s28, 4  ;;  %s1043_s29 = int_to_ptr.vmem [resolvable:$false] %s1042_s29 }
  0x2c   : > { %s1044_s6 = scalar_lea.vmem %s1043_s29, 2048  ;;  %p1045_p2 = scmp.lt.s32.totalorder %s1202_s13, %s1043_s29 }
  0x2d   : > { %p1040_p5 = pnand %p1038_p3, %p1024_p4  ;;  %p1046_p7 = scmp.lt.s32.totalorder %s1044_s6, %s1037_s27 }
  0x2f   : > { %p1041_p1 = pneg %p1040_p5  ;;  %p1047_p8 = por %p1046_p7, %p1045_p2 }
  0x31   : > { %p1048_p9 = pnand %p1047_p8, %p1041_p1 }
  0x33   : > { %1051 = shalt.err (!%p1048_p9)
}
  0x34   : > { %908 = dma.hbm_to_vmem [thread:$0]  (!%p1198_p0), %s1194_s11, 1024, %s1202_s13, %s158_s15  }
  0x35   : > { %p1314_p6 = scmp.lt.s32.totalorder %s1104_s24, 3  ;;  %p1315_p10 = scmp.ge.s32.totalorder %s1104_s24, 1 }
  0x37   : > { %p177_p4 = pnand %p1315_p10, %p1314_p6 }
  0x38   : > { %s182_s7 = sand.u32 (!%p177_p4), 1, %s1088_s21  }
  0x39   : > { %180 = sbr.rel (%p177_p4) target bundleno = 314 (0x13a), region = 32  ;;  %s892_s8 = sshll.u32 (!%p177_p4), %s182_s7, 6 }
  0x3a   : > { %s183_s9 = scalar_lea.sflag (!%p177_p4), [#allocation5], %s182_s7  ;;  %s186_s10 = scalar_lea.vmem (!%p177_p4), [#allocation4], %s892_s8 }
  0x40   : > { %1079 = dma.done.wait (%p1181_p12), %s183_s9, 1024  }
  0x41   : > { %1081 = vsyncadd (%p1181_p12), %s183_s9, 4294966272  ;;  %v1108_v0 = vmov 0.0   ;;  %v1109_v1 = vmov 0   ;;  %v225_v2 = vld [vmem:[%s186_s10 + $0x8] sm:$0xff]  ;;  %v227_v3 = vld [vmem:[%s186_s10 + $0x18] sm:$0xff]  ;;  %vm371_vm0 = vcmask 64512  }
  0x42   : > { %439 = vmatprep.mubr.f32.mxu0 %v1108_v0  ;;  %510 = vmatprep.mubr.f32.mxu1 %v1108_v0  ;;  %v224_v4 = vld [vmem:[%s186_s10] sm:$0xff]  ;;  %v226_v5 = vld [vmem:[%s186_s10 + $0x10] sm:$0xff]  ;;  %v229_v7 = vld [vmem:[%s186_s10 + $0x28] sm:$0xff]  ;;  %v238_v17 = vrot.slane %v225_v2, 4  ;;  %v250_v18 = vrot.slane %v227_v3, 4  ;;  %s280_s14 = sld [smem:[#allocation3]] }
  0x43   : > { %961 = vset.pattern.permute.xlu0 %v1109_v1  ;;  %375 = vmatprep.subr.mxu0 %v225_v2  ;;  %v370_v6 = vld [vmem:[%s1307_s1] sm:$0x7]  ;;  %v231_v8 = vld [vmem:[%s186_s10 + $0x38] sm:$0xff]  ;;  %v230_v10 = vld [vmem:[%s186_s10 + $0x30] sm:$0xff]  ;;  %v232_v12 = vrot.slane %v224_v4, 4  ;;  %v244_v14 = vrot.slane %v226_v5, 4 }
  0x44   : > { %446 = vmatprep.subr.mxu1 %v227_v3  ;;  %376 = vmatpush1.msra.mxu0 %v224_v4  ;;  %v228_v9 = vld [vmem:[%s186_s10 + $0x20] sm:$0xff]  ;;  %v268_v22 = vrot.slane %v230_v10, 4  ;;  %v239_v23 = vadd.f32 %v238_v17, %v225_v2  ;;  %v262_v24 = vrot.slane %v229_v7, 4  ;;  %v251_v25 = vadd.f32 %v250_v18, %v227_v3  ;;  %p215_p12 = scmp.lt.s32.totalorder %s1096_s22, 1 }
  0x45   : > { %447 = vmatpush1.msra.mxu1 %v226_v5  ;;  %895 = vmatmul.mubr.msk.f32.vlgmr.msra.gmra.mrb[0].mxu0 %vm371_vm0, %v370_v6  ;;  %v667_v11 = vld [vmem:[%s1308_s2] sm:$0x7]  ;;  %v233_v13 = vadd.f32 %v232_v12, %v224_v4  ;;  %v245_v16 = vadd.f32 %v244_v14, %v226_v5  ;;  %v256_v19 = vrot.slane %v228_v9, 4  ;;  %v274_v26 = vrot.slane %v231_v8, 4 }
  0x46   : > { %896 = vmatmul.mubr.msk.f32.vlgmr.msra.gmra.mrb[0].mxu1 %vm371_vm0, %v370_v6  ;;  %517 = vmatprep.subr.mxu0 %v229_v7  ;;  %v269_v30 = vadd.f32 %v268_v22, %v230_v10  ;;  %v240_v31 = vrot.slane %v239_v23, 2  ;;  %v263_v32 = vadd.f32 %v262_v24, %v229_v7  ;;  %v252_v33 = vrot.slane %v251_v25, 2  ;;  %s1324_s22 = smov (!%p215_p12, %s1096_s22), 1 }
  0x47   : > { %588 = vmatprep.subr.mxu1 %v231_v8  ;;  %518 = vmatpush1.msra.mxu0 %v228_v9  ;;  %v234_v15 = vrot.slane %v233_v13, 2  ;;  %v246_v21 = vrot.slane %v245_v16, 2  ;;  %v257_v27 = vadd.f32 %v256_v19, %v228_v9  ;;  %v275_v34 = vadd.f32 %v274_v26, %v231_v8  ;;  %s902_s15 = sshll.u32 %s1324_s22, 5 }
  0x48   : > { %589 = vmatpush1.msra.mxu1 %v230_v10  ;;  %581 = vmatprep.mubr.f32.mxu0 %v1108_v0  ;;  %v270_v38 = vrot.slane %v269_v30, 2  ;;  %v241_v39 = vadd.f32 %v240_v31, %v239_v23  ;;  %v264_v40 = vrot.slane %v263_v32, 2  ;;  %v253_v41 = vadd.f32 %v252_v33, %v251_v25  ;;  %s1267_s18 = scalar_lea.vmem %s1310_s4, %s902_s15 }
  0x49   : > { %652 = vmatprep.mubr.f32.mxu1 %v1108_v0  ;;  %897 = vmatmul.mubr.msk.f32.vlgmr.msra.gmra.mrb[2].mxu0 %vm371_vm0, %v370_v6  ;;  %v235_v20 = vadd.f32 %v234_v15, %v233_v13  ;;  %v247_v29 = vadd.f32 %v246_v21, %v245_v16  ;;  %v258_v35 = vrot.slane %v257_v27, 2  ;;  %v276_v42 = vrot.slane %v275_v34, 2 }
  0x4a   : > { %898 = vmatmul.mubr.msk.f32.vlgmr.msra.gmra.mrb[2].mxu1 %vm371_vm0, %v370_v6  ;;  %678 = vperm.xlu0 %961, %v667_v11   ;;  %v271_v46 = vadd.f32 %v270_v38, %v269_v30  ;;  %v242_v47 = vrot.slane %v241_v39, 1  ;;  %v265_v48 = vadd.f32 %v264_v40, %v263_v32  ;;  %v289_v49 = vstv %s280_s14 }
  0x4b   : > { %v236_v28 = vrot.slane %v235_v20, 1  ;;  %v248_v37 = vrot.slane %v247_v29, 1  ;;  %v259_v43 = vadd.f32 %v258_v35, %v257_v27  ;;  %v254_v50 = vrot.slane %v253_v41, 1 }
  0x4c   : > { %v277_v51 = vadd.f32 %v276_v42, %v275_v34  ;;  %v272_v54 = vrot.slane %v271_v46, 1  ;;  %v243_v56 = vadd.f32 %v242_v47, %v241_v39  ;;  %v266_v57 = vrot.slane %v265_v48, 1 }
  0x4d   : > { %v237_v36 = vadd.f32 %v236_v28, %v235_v20  ;;  %v249_v45 = vadd.f32 %v248_v37, %v247_v29  ;;  %v260_v52 = vrot.slane %v259_v43, 1  ;;  %v255_v58 = vadd.f32 %v254_v50, %v253_v41 }
  0x4e   : > { %v278_v59 = vrot.slane %v277_v51, 1  ;;  %v273_v62 = vadd.f32 %v272_v54, %v271_v46  ;;  %v282_v1 = vsub.f32 0.0, %v243_v56  ;;  %v267_v2 = vadd.f32 %v266_v57, %v265_v48 }
  0x4f   : > { %v281_v44 = vsub.f32 0.0, %v237_v36  ;;  %v283_v53 = vsub.f32 0.0, %v249_v45  ;;  %v261_v60 = vadd.f32 %v260_v52, %v259_v43  ;;  %v322_v61 = vadd.f32 1e-05, %v237_v36 }
  0x50   : > { %v324_v3 = vadd.f32 1e-05, %v249_v45  ;;  %v284_v4 = vsub.f32 0.0, %v255_v58  ;;  %v279_v5 = vadd.f32 %v278_v59, %v277_v51  ;;  %v323_v6 = vadd.f32 1e-05, %v243_v56 }
  0x51   : > { %v290_v55 = vmul.f32 %v289_v49, %v281_v44  ;;  %v292_v0 = vmul.f32 %v289_v49, %v283_v53  ;;  %962 = vrcp.f32 %v322_v61  ;;  %v325_v7 = vadd.f32 1e-05, %v255_v58 }
  0x52   : > { %v285_v8 = vsub.f32 0.0, %v261_v60  ;;  %v287_v10 = vsub.f32 0.0, %v273_v62  ;;  %v286_v11 = vsub.f32 0.0, %v267_v2  ;;  %v291_v12 = vmul.f32 %v289_v49, %v282_v1 }
  0x53   : > { %v298_v63 = vmul.f32 1.442695, %v290_v55  ;;  %v302_v9 = vmul.f32 1.442695, %v292_v0  ;;  %v326_v13 = vadd.f32 1e-05, %v261_v60  ;;  %v293_v15 = vmul.f32 %v289_v49, %v284_v4 }
  0x54   : > { %v288_v14 = vsub.f32 0.0, %v279_v5  ;;  %v328_v16 = vadd.f32 1e-05, %v273_v62  ;;  %v294_v17 = vmul.f32 %v289_v49, %v285_v8  ;;  %v327_v18 = vadd.f32 1e-05, %v267_v2 }
  0x55   : > { %964 = vpow2.f32 %v298_v63  ;;  %v296_v19 = vmul.f32 %v289_v49, %v287_v10  ;;  %v329_v20 = vadd.f32 1e-05, %v279_v5  ;;  %v300_v21 = vmul.f32 1.442695, %v291_v12 }
  0x56   : > { %966 = vrcp.f32 %v324_v3  ;;  %v295_v22 = vmul.f32 %v289_v49, %v286_v11  ;;  %v304_v23 = vmul.f32 1.442695, %v293_v15  ;;  %v297_v24 = vmul.f32 %v289_v49, %v288_v14 }
  0x57   : > { %968 = vrcp.f32 %v323_v6  ;;  %v306_v25 = vmul.f32 1.442695, %v294_v17  ;;  %v310_v26 = vmul.f32 1.442695, %v296_v19 }
  0x58   : > { %970 = vrcp.f32 %v325_v7  ;;  %v308_v28 = vmul.f32 1.442695, %v295_v22  ;;  %v312_v30 = vmul.f32 1.442695, %v297_v24 }
  0x59   : > { %972 = vpow2.f32 %v302_v9 }
  0x5a   : > { %974 = vrcp.f32 %v326_v13 }
  0x5b   : > { %976 = vrcp.f32 %v328_v16  ;;  %v963_v27 = vpop.eup %962 }
  0x5c   : > { %978 = vrcp.f32 %v327_v18  ;;  %v338_v37 = vmul.f32 %v963_v27, %v322_v61 }
  0x5d   : > { %980 = vrcp.f32 %v329_v20 }
  0x5e   : > { %982 = vpow2.f32 %v300_v21  ;;  %v346_v45 = vsub.f32 2.0, %v338_v37 }
  0x5f   : > { %v965_v29 = vpop.eup %964  ;;  %984 = vpow2.f32 %v304_v23 }
  0x60   : > { %v967_v31 = vpop.eup %966  ;;  %986 = vpow2.f32 %v306_v25  ;;  %v314_v55 = vsub.f32 1.0, %v965_v29  ;;  %v354_v61 = vmul.f32 %v963_v27, %v346_v45 }
  0x61   : > { %v969_v32 = vpop.eup %968  ;;  %988 = vpow2.f32 %v310_v26  ;;  %v340_v38 = vmul.f32 %v967_v31, %v324_v3 }
  0x62   : > { %v971_v33 = vpop.eup %970  ;;  %990 = vpow2.f32 %v308_v28  ;;  %v339_v40 = vmul.f32 %v969_v32, %v323_v6  ;;  %v668_v5 = vsub.f32 1.0, %v314_v55  ;;  %v362_v14 = vmul.f32 %v354_v61, %v314_v55 }
  0x63   : > { %v973_v34 = vpop.eup %972  ;;  %992 = vpow2.f32 %v312_v30  ;;  %v341_v41 = vmul.f32 %v971_v33, %v325_v7  ;;  %v348_v46 = vsub.f32 2.0, %v340_v38 }
  0x64   : > { %v975_v35 = vpop.eup %974  ;;  %v347_v50 = vsub.f32 2.0, %v339_v40  ;;  %v316_v56 = vsub.f32 1.0, %v973_v34 }
  0x65   : > { %v977_v36 = vpop.eup %976  ;;  %v342_v47 = vmul.f32 %v975_v35, %v326_v13  ;;  %v349_v51 = vsub.f32 2.0, %v341_v41  ;;  %v356_v62 = vmul.f32 %v967_v31, %v348_v46 }
  0x66   : > { %v979_v39 = vpop.eup %978  ;;  %v344_v48 = vmul.f32 %v977_v36, %v328_v16  ;;  %v355_v1 = vmul.f32 %v969_v32, %v347_v50  ;;  %v670_v6 = vsub.f32 1.0, %v316_v56 }
  0x67   : > { %v981_v42 = vpop.eup %980  ;;  %v343_v52 = vmul.f32 %v979_v39, %v327_v18  ;;  %v350_v63 = vsub.f32 2.0, %v342_v47  ;;  %v357_v2 = vmul.f32 %v971_v33, %v349_v51  ;;  %v364_v15 = vmul.f32 %v356_v62, %v316_v56 }
  0x68   : > { %v983_v43 = vpop.eup %982  ;;  %v345_v53 = vmul.f32 %v981_v42, %v329_v20  ;;  %v352_v0 = vsub.f32 2.0, %v344_v48 }
  0x69   : > { %v985_v44 = vpop.eup %984  ;;  %v315_v58 = vsub.f32 1.0, %v983_v43  ;;  %v351_v3 = vsub.f32 2.0, %v343_v52  ;;  %v358_v16 = vmul.f32 %v975_v35, %v350_v63 }
  0x6a   : > { %v987_v49 = vpop.eup %986  ;;  %v317_v59 = vsub.f32 1.0, %v985_v44  ;;  %v353_v4 = vsub.f32 2.0, %v345_v53  ;;  %v360_v17 = vmul.f32 %v977_v36, %v352_v0 }
  0x6b   : > { %v989_v54 = vpop.eup %988  ;;  %v318_v7 = vsub.f32 1.0, %v987_v49  ;;  %v669_v10 = vsub.f32 1.0, %v315_v58  ;;  %v363_v18 = vmul.f32 %v355_v1, %v315_v58  ;;  %v359_v20 = vmul.f32 %v979_v39, %v351_v3 }
  0x6c   : > { %v991_v57 = vpop.eup %990  ;;  %v320_v8 = vsub.f32 1.0, %v989_v54  ;;  %v671_v11 = vsub.f32 1.0, %v317_v59  ;;  %v365_v19 = vmul.f32 %v357_v2, %v317_v59  ;;  %v361_v21 = vmul.f32 %v981_v42, %v353_v4 }
  0x6d   : > { %v993_v60 = vpop.eup %992  ;;  %v319_v12 = vsub.f32 1.0, %v991_v57  ;;  %v672_v24 = vsub.f32 1.0, %v318_v7  ;;  %v366_v35 = vmul.f32 %v358_v16, %v318_v7 }
  0x6e   : > { %v321_v13 = vsub.f32 1.0, %v993_v60  ;;  %v674_v25 = vsub.f32 1.0, %v320_v8  ;;  %v368_v36 = vmul.f32 %v360_v17, %v320_v8 }
  0x6f   : > { %v673_v30 = vsub.f32 1.0, %v319_v12  ;;  %v367_v39 = vmul.f32 %v359_v20, %v319_v12 }
  0x70   : > { %v675_v31 = vsub.f32 1.0, %v321_v13  ;;  %v369_v41 = vmul.f32 %v361_v21, %v321_v13 }
  0xc9   : > { %v679_v9 = vpop.permute.xlu0 %678 }
  0xca   : > { %v681_v22 = vmul.f32 %v679_v9, %v668_v5  ;;  %v683_v23 = vmul.f32 %v679_v9, %v670_v6  ;;  %v682_v28 = vmul.f32 %v679_v9, %v669_v10  ;;  %v684_v29 = vmul.f32 %v679_v9, %v671_v11 }
  0xcb   : > { %v685_v44 = vmul.f32 %v679_v9, %v672_v24  ;;  %v687_v45 = vmul.f32 %v679_v9, %v674_v25  ;;  %v686_v50 = vmul.f32 %v679_v9, %v673_v30  ;;  %v688_v51 = vmul.f32 %v679_v9, %v675_v31 }
 0x118   : > { %v441_v26 = vpop.f32.mrb[0].mxu0 }
 0x119   : > { %v512_v27 = vpop.f32.mrb[0].mxu1  ;;  %v659_v32 = vmul.f32 %v441_v26, %v362_v14  ;;  %v443_v34 = vpop.f32.mrb[1].mxu0 }
 0x11a   : > { %v661_v33 = vmul.f32 %v512_v27, %v364_v15  ;;  %v514_v37 = vpop.f32.mrb[1].mxu1  ;;  %v660_v38 = vmul.f32 %v443_v34, %v363_v18 }
 0x11b   : > { %v662_v40 = vmul.f32 %v514_v37, %v365_v19  ;;  %v689_v42 = vadd.f32 %v681_v22, %v659_v32 }
 0x11c   : > { %v691_v43 = vadd.f32 %v683_v23, %v661_v33  ;;  %v690_v46 = vadd.f32 %v682_v28, %v660_v38  ;;  %v583_v48 = vpop.f32.mrb[2].mxu0 }
 0x11d   : > { %v692_v47 = vadd.f32 %v684_v29, %v662_v40  ;;  %v654_v49 = vpop.f32.mrb[2].mxu1  ;;  %v697_v52 = vmax.f32 %v689_v42, 0.0  ;;  %v663_v54 = vmul.f32 %v583_v48, %v366_v35  ;;  %v585_v56 = vpop.f32.mrb[3].mxu0 }
 0x11e   : > { %v699_v53 = vmax.f32 %v691_v43, 0.0  ;;  %v665_v55 = vmul.f32 %v654_v49, %v368_v36  ;;  %v656_v57 = vpop.f32.mrb[3].mxu1  ;;  %v698_v58 = vmax.f32 %v690_v46, 0.0  ;;  %v664_v60 = vmul.f32 %v585_v56, %v367_v39 }
 0x11f   : > { %v700_v59 = vmax.f32 %v692_v47, 0.0  ;;  %v666_v61 = vmul.f32 %v656_v57, %v369_v41  ;;  %v705_v62 = vmin.f32 %v697_v52, 1.0  ;;  %v693_v0 = vadd.f32 %v685_v44, %v663_v54 }
 0x120   : > { %v707_v63 = vmin.f32 %v699_v53, 1.0  ;;  %v695_v1 = vadd.f32 %v687_v45, %v665_v55  ;;  %v706_v2 = vmin.f32 %v698_v58, 1.0  ;;  %v694_v4 = vadd.f32 %v686_v50, %v664_v60 }
 0x121   : > { %v708_v3 = vmin.f32 %v700_v59, 1.0  ;;  %v696_v5 = vadd.f32 %v688_v51, %v666_v61  ;;  %994 = vrsqrt.f32 %v705_v62  ;;  %v701_v6 = vmax.f32 %v693_v0, 0.0 }
 0x122   : > { %996 = vrsqrt.f32 %v707_v63  ;;  %v703_v7 = vmax.f32 %v695_v1, 0.0  ;;  %v702_v8 = vmax.f32 %v694_v4, 0.0  ;;  %vm715_vm1 = vcmp.eq.f32.partialorder %v705_v62, inf }
 0x123   : > { %998 = vrsqrt.f32 %v706_v2  ;;  %v704_v9 = vmax.f32 %v696_v5, 0.0  ;;  %v709_v10 = vmin.f32 %v701_v6, 1.0  ;;  %vm717_vm2 = vcmp.eq.f32.partialorder %v705_v62, 0.0 }
 0x124   : > { %1000 = vrsqrt.f32 %v708_v3  ;;  %v1251_v11 = vmin.f32 %v703_v7, 1.0  ;;  %v1253_v12 = vmin.f32 %v702_v8, 1.0  ;;  %v718_v17 = vand.u32 2147483648, %v705_v62 }
 0x125   : > { %v1255_v13 = vmin.f32 %v704_v9, 1.0  ;;  %1002 = vrsqrt.f32 %v709_v10  ;;  %vm729_vm3 = vcmp.eq.f32.partialorder %v707_v63, inf  ;;  %vm731_vm4 = vcmp.eq.f32.partialorder %v707_v63, 0.0 }
 0x126   : > { %1004 = vrsqrt.f32 %v1251_v11  ;;  %v732_v20 = vand.u32 2147483648, %v707_v63  ;;  %vm722_vm5 = vcmp.eq.f32.partialorder %v706_v2, inf  ;;  %vm724_vm6 = vcmp.eq.f32.partialorder %v706_v2, 0.0 }
 0x127   : > { %1006 = vrsqrt.f32 %v1253_v12  ;;  %v725_v26 = vand.u32 2147483648, %v706_v2  ;;  %vm736_vm7 = vcmp.eq.f32.partialorder %v708_v3, inf  ;;  %v739_v30 = vand.u32 2147483648, %v708_v3 }
 0x128   : > { %1008 = vrsqrt.f32 %v1255_v13  ;;  %vm738_vm8 = vcmp.eq.f32.partialorder %v708_v3, 0.0  ;;  %vm743_vm9 = vcmp.eq.f32.partialorder %v709_v10, inf  ;;  %vm745_vm10 = vcmp.eq.f32.partialorder %v709_v10, 0.0 }
 0x129   : > { %v746_v40 = vand.u32 2147483648, %v709_v10  ;;  %vm757_vm11 = vcmp.eq.f32.partialorder %v1251_v11, inf  ;;  %vm759_vm12 = vcmp.eq.f32.partialorder %v1251_v11, 0.0  ;;  %v760_v42 = vand.u32 2147483648, %v1251_v11 }
 0x12a   : > { %vm750_vm13 = vcmp.eq.f32.partialorder %v1253_v12, inf  ;;  %vm752_vm14 = vcmp.eq.f32.partialorder %v1253_v12, 0.0  ;;  %v753_v48 = vand.u32 2147483648, %v1253_v12  ;;  %vm764_vm15 = vcmp.eq.f32.partialorder %v1255_v13, inf }
 0x12b   : > { %v995_v14 = vpop.eup %994  ;;  %v767_v52 = vand.u32 2147483648, %v1255_v13  ;;  %vm766_vm0 = vcmp.eq.f32.partialorder %v1255_v13, 0.0 }
 0x12c   : > { %v997_v15 = vpop.eup %996  ;;  %v714_v16 = vmul.f32 %v995_v14, %v705_v62 }
 0x12d   : > { %v999_v18 = vpop.eup %998  ;;  %v728_v19 = vmul.f32 %v997_v15, %v707_v63 }
 0x12e   : > { %v1001_v21 = vpop.eup %1000  ;;  %v716_v22 = vsel %vm715_vm1, %v705_v62, %v714_v16  ;;  %v721_v23 = vmul.f32 %v999_v18, %v706_v2 }
 0x12f   : > { %v719_v24 = vsel %vm717_vm2, %v718_v17, %v716_v22  ;;  %v730_v25 = vsel %vm729_vm3, %v707_v63, %v728_v19  ;;  %v735_v27 = vmul.f32 %v1001_v21, %v708_v3  ;;  %v1003_v37 = vpop.eup %1002 }
 0x130   : > { %v733_v28 = vsel %vm731_vm4, %v732_v20, %v730_v25  ;;  %v723_v29 = vsel %vm722_vm5, %v706_v2, %v721_v23  ;;  %v1005_v36 = vpop.eup %1004  ;;  %v742_v38 = vmul.f32 %v1003_v37, %v709_v10 }
 0x131   : > { %v726_v31 = vsel %vm724_vm6, %v725_v26, %v723_v29  ;;  %v737_v32 = vsel %vm736_vm7, %v708_v3, %v735_v27  ;;  %v1007_v39 = vpop.eup %1006  ;;  %v756_v41 = vmul.f32 %v1005_v36, %v1251_v11 }
 0x132   : > { %v777_v33 = vcombine.low %v719_v24, %v726_v31  ;;  %v740_v34 = vsel %vm738_vm8, %v739_v30, %v737_v32  ;;  %v1009_v43 = vpop.eup %1008  ;;  %v744_v44 = vsel %vm743_vm9, %v709_v10, %v742_v38  ;;  %v749_v45 = vmul.f32 %v1007_v39, %v1253_v12 }
 0x133   : > { %v778_v35 = vcombine.low %v733_v28, %v740_v34  ;;  %v747_v46 = vsel %vm745_vm10, %v746_v40, %v744_v44  ;;  %v758_v47 = vsel %vm757_vm11, %v1251_v11, %v756_v41  ;;  %v763_v49 = vmul.f32 %v1009_v43, %v1255_v13 }
 0x134   : > { %785 = vst [vmem:[%s1267_s18] sm:$0x77] %v777_v33  ;;  %v761_v50 = vsel %vm759_vm12, %v760_v42, %v758_v47  ;;  %v751_v51 = vsel %vm750_vm13, %v1253_v12, %v749_v45 }
 0x135   : > { %786 = vst [vmem:[%s1267_s18 + $0x8] sm:$0x77] %v778_v35  ;;  %v754_v53 = vsel %vm752_vm14, %v753_v48, %v751_v51  ;;  %v765_v54 = vsel %vm764_vm15, %v1255_v13, %v763_v49 }
 0x136   : > { %v779_v55 = vcombine.low %v747_v46, %v754_v53  ;;  %v768_v56 = vsel %vm766_vm0, %v767_v52, %v765_v54 }
 0x137   : > { %v780_v57 = vcombine.low %v761_v50, %v768_v56 }
 0x138   : > { %787 = vst [vmem:[%s1267_s18 + $0x10] sm:$0x77] %v779_v55 }
 0x139   : > { %788 = vst [vmem:[%s1267_s18 + $0x18] sm:$0x77] %v780_v57 }
 0x13a PF: > { %s23_s24 = sadd.s32 1, %s1104_s24   ;;  %s1316_s20 = smov %s1088_s21 }
 0x13b   : > { %p20_p0 = scmp.ge.s32.totalorder %s23_s24, 4   ;;  %s1317_s21 = smov %s1092_s0 }
 0x13c   : > { %s1318_s0 = smov %s1187_s5  ;;  %s1319_s22 = smov %s1100_s23 }
 0x13d   : > { %s1320_s23 = smov %s1322_s26  ;;  %22 = sbr.rel (!%p20_p0) target bundleno = 19 (0x13), region = 72 }
 0x144   :  { %819 = vsyncpa [#allocation5], 1 }
 0x145   :  { %821 = vsyncpa [#allocation5 + $0x1], 1 }

</bundles_post_ra>
